<compile_context>
chip_gen: v5e
topology: v5e:2x2
jax: 0.10.0
libtpu: 0.0.40
codegen_flags: <defaults>
</compile_context>

<pallas_src>
import jax
import jax.numpy as jnp
from jax import lax
from jax.experimental import pallas as pl
from jax.experimental.pallas import tpu as pltpu

HIDDEN = 64
OUT_DIM = 18
OUT_PAD = 128          # lane-dense output slab; real columns = first OUT_DIM
B_TILE_MAX = 128       # row tile cap: safe for v5e MXU and v7x's smaller VMEM


def _lstm_last_fc_kernel(x_ref, w_ih_ref, w_hh_ref, b_ref, fc_w_ref, fc_b_ref,
                         out_ref, xb_ref):
    """One batch tile.

    x_ref   : (T, Bt)         time-major input slice
    w_ih_ref: (1, 4H)         gate order [i, f, o, g] (reordered in wrapper)
    w_hh_ref: (H, 4H)
    b_ref   : (1, 4H)         b_ih + b_hh
    fc_w_ref: (H, OUT_PAD)    zero-padded past OUT_DIM
    fc_b_ref: (1, OUT_PAD)    zero-padded past OUT_DIM
    out_ref : (Bt, OUT_PAD)
    xb_ref  : (T, Bt, 4H)     VMEM scratch: hoisted input projection + bias
    """
    T, Bt = x_ref.shape
    H = HIDDEN

    # ---- hoist input projection + bias out of the serial recurrence --------
    # xb[t] = x[t, :, None] * w_ih + b   (fully parallel over T and Bt)
    x = x_ref[...]                                    # (T, Bt)
    w_ih = w_ih_ref[...]                              # (1, 4H)
    b = b_ref[...]                                    # (1, 4H)
    xb_ref[...] = x[:, :, None] * w_ih[None, :, :] + b[None, :, :]

    w_hh = w_hh_ref[...]                              # (H, 4H)

    def step(t, carry):
        h, c = carry
        # gates = xb[t] + h @ W_hh   (leading-dim index: cheap sublane load)
        gates = xb_ref[t] + jnp.dot(h, w_hh,
                                    preferred_element_type=jnp.float32)  # (Bt,4H)
        # gate order [i, f, o, g]: one contiguous sigmoid over 3H, one tanh
        sig = jax.nn.sigmoid(gates[:, :3 * H])
        g_g = jnp.tanh(gates[:, 3 * H:])
        i_g = sig[:, 0:H]
        f_g = sig[:, H:2 * H]
        o_g = sig[:, 2 * H:3 * H]
        c_new = f_g * c + i_g * g_g
        h_new = o_g * jnp.tanh(c_new)
        return (h_new, c_new)

    h0 = jnp.zeros((Bt, H), jnp.float32)
    c0 = jnp.zeros((Bt, H), jnp.float32)
    # T is a small static constant -> full unroll gives the LLO scheduler the
    # whole dependence chain (MXU push of step t can overlap VPU/EUP of t-1).
    h_last, _ = lax.fori_loop(0, T, step, (h0, c0), unroll=True)

    # fc -> relu -> L2 normalize.  Padded fc columns are exactly zero, so the
    # norm over OUT_PAD lanes equals the norm over the real OUT_DIM columns.
    logits = (jnp.dot(h_last, fc_w_ref[...], preferred_element_type=jnp.float32)
              + fc_b_ref[...])                        # (Bt, OUT_PAD)
    out = jnp.maximum(logits, 0.0)
    norm = jnp.sqrt(jnp.sum(out * out, axis=1, keepdims=True))
    inv = pl.reciprocal(norm + 1e-8, approx=False)    # EUP path, exact
    out_ref[...] = out * inv


def _reorder_gate_cols(p):
    """Permute gate columns [i, f, g, o] (torch) -> [i, f, o, g]."""
    H = p.shape[-1] // 4
    return jnp.concatenate(
        [p[..., :2 * H], p[..., 3 * H:], p[..., 2 * H:3 * H]], axis=-1)


@jax.jit
def seq_regressor(x, w_ih, w_hh, bias, fc_w, fc_b):
    B, T = x.shape
    H = HIDDEN

    # ---- trace-time parameter massaging (free at runtime) ------------------
    w_ih_r = _reorder_gate_cols(w_ih)
    w_hh_r = _reorder_gate_cols(w_hh)
    bias_r = _reorder_gate_cols(bias)
    fc_w_p = jnp.zeros((H, OUT_PAD), jnp.float32).at[:, :OUT_DIM].set(fc_w)
    fc_b_p = jnp.zeros((1, OUT_PAD), jnp.float32).at[:, :OUT_DIM].set(fc_b)

    # ---- batch tiling -------------------------------------------------------
    bt = B if B <= B_TILE_MAX else B_TILE_MAX
    b_pad = ((B + bt - 1) // bt) * bt
    x_tb = jnp.transpose(x)                           # (T, B): time-major
    if b_pad != B:
        x_tb = jnp.pad(x_tb, ((0, 0), (0, b_pad - B)))
    n_tiles = b_pad // bt

    out_padded = pl.pallas_call(
        _lstm_last_fc_kernel,
        out_shape=jax.ShapeDtypeStruct((b_pad, OUT_PAD), jnp.float32),
        grid_spec=pltpu.PrefetchScalarGridSpec(
            num_scalar_prefetch=0,
            grid=(n_tiles,),
            in_specs=[
                pl.BlockSpec((T, bt), lambda i: (0, i)),          # x (time-major)
                pl.BlockSpec((1, 4 * H), lambda i: (0, 0)),       # w_ih (resident)
                pl.BlockSpec((H, 4 * H), lambda i: (0, 0)),       # w_hh (resident)
                pl.BlockSpec((1, 4 * H), lambda i: (0, 0)),       # bias (resident)
                pl.BlockSpec((H, OUT_PAD), lambda i: (0, 0)),     # fc_w (resident)
                pl.BlockSpec((1, OUT_PAD), lambda i: (0, 0)),     # fc_b (resident)
            ],
            out_specs=pl.BlockSpec((bt, OUT_PAD), lambda i: (i, 0)),
            scratch_shapes=[pltpu.VMEM((T, bt, 4 * H), jnp.float32)],
        ),
        compiler_params=pltpu.CompilerParams(
            dimension_semantics=("parallel",),        # megacore split on v7x
            vmem_limit_bytes=32 * 1024 * 1024,        # safe on v5e/v6e/v7x
        ),
    )(x_tb, w_ih_r, w_hh_r, bias_r, fc_w_p, fc_b_p)

    return out_padded[:B, :OUT_DIM]


def _reference(x, w_ih, w_hh, bias, fc_w, fc_b):
    """Pure-JAX reference matching torch.nn.LSTM semantics (gate order i,f,g,o)."""
    B, T = x.shape
    H = HIDDEN
    h = jnp.zeros((B, H), jnp.float32)
    c = jnp.zeros((B, H), jnp.float32)
    for t in range(T):
        gates = x[:, t:t + 1] * w_ih + h @ w_hh + bias
        i = jax.nn.sigmoid(gates[:, 0:H])
        f = jax.nn.sigmoid(gates[:, H:2 * H])
        g = jnp.tanh(gates[:, 2 * H:3 * H])
        o = jax.nn.sigmoid(gates[:, 3 * H:4 * H])
        c = f * c + i * g
        h = o * jnp.tanh(c)
    out = jnp.maximum(h @ fc_w + fc_b, 0.0)
    return out / (jnp.linalg.norm(out, axis=1, keepdims=True) + 1e-8)


if __name__ == "__main__":
    key = jax.random.PRNGKey(0)
    k_x, k1, k2, k3, k4, k5, k6 = jax.random.split(key, 7)

    B, T, H = 2, 8, HIDDEN
    bound = 1.0 / (H ** 0.5)   # PyTorch LSTM / Linear uniform init bound

    x = jax.random.normal(k_x, (B, T), dtype=jnp.float32)

    # LSTM params (torch shapes: w_ih (4H,1), w_hh (4H,H), b_ih/b_hh (4H,)),
    # stored transposed / combined, torch gate order [i, f, g, o].
    w_ih = jax.random.uniform(k1, (1, 4 * H), jnp.float32, -bound, bound)
    w_hh = jax.random.uniform(k2, (H, 4 * H), jnp.float32, -bound, bound)
    b_ih = jax.random.uniform(k3, (1, 4 * H), jnp.float32, -bound, bound)
    b_hh = jax.random.uniform(k4, (1, 4 * H), jnp.float32, -bound, bound)
    bias = b_ih + b_hh

    # fc params (torch: weight (18, H), bias (18,)) stored transposed.
    fc_w = jax.random.uniform(k5, (H, OUT_DIM), jnp.float32, -bound, bound)
    fc_b = jax.random.uniform(k6, (1, OUT_DIM), jnp.float32, -bound, bound)

    # TODO(synk): nn.LSTM(dropout=0.1) is a no-op for num_layers=1 / eval mode,
    # so it is intentionally not implemented.
    out = seq_regressor(x, w_ih, w_hh, bias, fc_w, fc_b)
    out = jax.block_until_ready(out)

    ref = _reference(x, w_ih, w_hh, bias, fc_w, fc_b)
    assert out.shape == (B, OUT_DIM)
    assert jnp.max(jnp.abs(out - ref)) < 1e-5

    print("KERNEL_OK")
</pallas_src>

<mosaic_0001>
module attributes {stable_mosaic.version = 11 : i64} {
  func.func @_lstm_last_fc_kernel(%arg0: i32, %arg1: memref<8x2xf32, #tpu.memory_space<vmem>>, %arg2: memref<1x256xf32, #tpu.memory_space<vmem>>, %arg3: memref<64x256xf32, #tpu.memory_space<vmem>>, %arg4: memref<1x256xf32, #tpu.memory_space<vmem>>, %arg5: memref<64x128xf32, #tpu.memory_space<vmem>>, %arg6: memref<1x128xf32, #tpu.memory_space<vmem>>, %arg7: memref<2x128xf32, #tpu.memory_space<vmem>>, %arg8: memref<8x2x256xf32, #tpu.memory_space<vmem>>) attributes {dimension_semantics = [#tpu.dimension_semantics<parallel>], iteration_bounds = array<i64: 1>, scalar_prefetch = 0 : i64, scratch_operands = 1 : i64, tpu.core_type = #tpu.core_type<tc>, window_params = [{transform_indices = @transform_0, window_bounds = array<i64: 8, 2>}, {pipeline_mode = #tpu.pipeline_mode<synchronous>, transform_indices = @transform_1, window_bounds = array<i64: 1, 256>}, {pipeline_mode = #tpu.pipeline_mode<synchronous>, transform_indices = @transform_2, window_bounds = array<i64: 64, 256>}, {pipeline_mode = #tpu.pipeline_mode<synchronous>, transform_indices = @transform_3, window_bounds = array<i64: 1, 256>}, {pipeline_mode = #tpu.pipeline_mode<synchronous>, transform_indices = @transform_4, window_bounds = array<i64: 64, 128>}, {pipeline_mode = #tpu.pipeline_mode<synchronous>, transform_indices = @transform_5, window_bounds = array<i64: 1, 128>}, {transform_indices = @transform_6, window_bounds = array<i64: 2, 128>}]} {
    %c0 = arith.constant 0 : index
    %c0_0 = arith.constant 0 : index
    %0 = vector.load %arg1[%c0, %c0_0] : memref<8x2xf32, #tpu.memory_space<vmem>>, vector<8x2xf32>
    %c0_1 = arith.constant 0 : index
    %c0_2 = arith.constant 0 : index
    %1 = vector.load %arg2[%c0_1, %c0_2] : memref<1x256xf32, #tpu.memory_space<vmem>>, vector<1x256xf32>
    %c0_3 = arith.constant 0 : index
    %c0_4 = arith.constant 0 : index
    %2 = vector.load %arg4[%c0_3, %c0_4] : memref<1x256xf32, #tpu.memory_space<vmem>>, vector<1x256xf32>
    %3 = vector.shape_cast %0 : vector<8x2xf32> to vector<8x2x1xf32>
    %4 = vector.shape_cast %1 : vector<1x256xf32> to vector<1x1x256xf32>
    %5 = vector.broadcast %3 : vector<8x2x1xf32> to vector<8x2x256xf32>
    %6 = vector.broadcast %4 : vector<1x1x256xf32> to vector<8x2x256xf32>
    %7 = arith.mulf %5, %6 : vector<8x2x256xf32>
    %8 = vector.shape_cast %2 : vector<1x256xf32> to vector<1x1x256xf32>
    %9 = vector.broadcast %8 : vector<1x1x256xf32> to vector<8x2x256xf32>
    %10 = arith.addf %7, %9 : vector<8x2x256xf32>
    %c0_5 = arith.constant 0 : index
    %c0_6 = arith.constant 0 : index
    %c0_7 = arith.constant 0 : index
    %11 = vector.load %arg8[%c0_5, %c0_6, %c0_7] : memref<8x2x256xf32, #tpu.memory_space<vmem>>, vector<8x2x256xf32>
    tpu.vector_store %arg8[%c0_5, %c0_6, %c0_7], %10 {strides = array<i32>} : memref<8x2x256xf32, #tpu.memory_space<vmem>>, vector<8x2x256xf32>,
    %c0_8 = arith.constant 0 : index
    %c0_9 = arith.constant 0 : index
    %12 = vector.load %arg3[%c0_8, %c0_9] : memref<64x256xf32, #tpu.memory_space<vmem>>, vector<64x256xf32>
    %cst = arith.constant 0.000000e+00 : f32
    %13 = vector.broadcast %cst : f32 to vector<2x64xf32>
    %cst_10 = arith.constant 0.000000e+00 : f32
    %14 = vector.broadcast %cst_10 : f32 to vector<2x64xf32>
    %c0_i32 = arith.constant 0 : i32
    %15 = arith.index_cast %c0_i32 : i32 to index
    %c0_11 = arith.constant 0 : index
    %c0_12 = arith.constant 0 : index
    %16 = vector.load %arg8[%15, %c0_11, %c0_12] : memref<8x2x256xf32, #tpu.memory_space<vmem>>, vector<1x2x256xf32>
    %17 = vector.shape_cast %16 : vector<1x2x256xf32> to vector<2x256xf32>
    %cst_13 = arith.constant dense<0.000000e+00> : vector<2x256xf32>
    %18 = tpu.matmul %13, %12, %cst_13 {dimension_numbers = #tpu.dot_dimension_numbers<[1], [0], [0], [1], [0, 0, 1, 1], [], []>} : vector<2x64xf32>, vector<64x256xf32>, vector<2x256xf32> -> vector<2x256xf32>
    %19 = arith.addf %17, %18 : vector<2x256xf32>
    %20 = vector.extract_strided_slice %19 {offsets = [0, 0], sizes = [2, 192], strides = [1, 1]} : vector<2x256xf32> to vector<2x192xf32>
    %21 = arith.negf %20 : vector<2x192xf32>
    %22 = math.exp %21 : vector<2x192xf32>
    %cst_14 = arith.constant 1.000000e+00 : f32
    %23 = vector.broadcast %cst_14 : f32 to vector<2x192xf32>
    %24 = arith.addf %23, %22 : vector<2x192xf32>
    %25 = arith.divf %23, %24 : vector<2x192xf32>
    %26 = vector.extract_strided_slice %19 {offsets = [0, 192], sizes = [2, 64], strides = [1, 1]} : vector<2x256xf32> to vector<2x64xf32>
    %27 = math.tanh %26 : vector<2x64xf32>
    %28 = vector.extract_strided_slice %25 {offsets = [0, 0], sizes = [2, 64], strides = [1, 1]} : vector<2x192xf32> to vector<2x64xf32>
    %29 = vector.extract_strided_slice %25 {offsets = [0, 64], sizes = [2, 64], strides = [1, 1]} : vector<2x192xf32> to vector<2x64xf32>
    %30 = vector.extract_strided_slice %25 {offsets = [0, 128], sizes = [2, 64], strides = [1, 1]} : vector<2x192xf32> to vector<2x64xf32>
    %31 = arith.mulf %29, %14 : vector<2x64xf32>
    %32 = arith.mulf %28, %27 : vector<2x64xf32>
    %33 = arith.addf %31, %32 : vector<2x64xf32>
    %34 = math.tanh %33 : vector<2x64xf32>
    %35 = arith.mulf %30, %34 : vector<2x64xf32>
    %c1_i32 = arith.constant 1 : i32
    %36 = arith.index_cast %c1_i32 : i32 to index
    %c0_15 = arith.constant 0 : index
    %c0_16 = arith.constant 0 : index
    %37 = vector.load %arg8[%36, %c0_15, %c0_16] : memref<8x2x256xf32, #tpu.memory_space<vmem>>, vector<1x2x256xf32>
    %38 = vector.shape_cast %37 : vector<1x2x256xf32> to vector<2x256xf32>
    %cst_17 = arith.constant dense<0.000000e+00> : vector<2x256xf32>
    %39 = tpu.matmul %35, %12, %cst_17 {dimension_numbers = #tpu.dot_dimension_numbers<[1], [0], [0], [1], [0, 0, 1, 1], [], []>} : vector<2x64xf32>, vector<64x256xf32>, vector<2x256xf32> -> vector<2x256xf32>
    %40 = arith.addf %38, %39 : vector<2x256xf32>
    %41 = vector.extract_strided_slice %40 {offsets = [0, 0], sizes = [2, 192], strides = [1, 1]} : vector<2x256xf32> to vector<2x192xf32>
    %42 = arith.negf %41 : vector<2x192xf32>
    %43 = math.exp %42 : vector<2x192xf32>
    %cst_18 = arith.constant 1.000000e+00 : f32
    %44 = vector.broadcast %cst_18 : f32 to vector<2x192xf32>
    %45 = arith.addf %44, %43 : vector<2x192xf32>
    %46 = arith.divf %44, %45 : vector<2x192xf32>
    %47 = vector.extract_strided_slice %40 {offsets = [0, 192], sizes = [2, 64], strides = [1, 1]} : vector<2x256xf32> to vector<2x64xf32>
    %48 = math.tanh %47 : vector<2x64xf32>
    %49 = vector.extract_strided_slice %46 {offsets = [0, 0], sizes = [2, 64], strides = [1, 1]} : vector<2x192xf32> to vector<2x64xf32>
    %50 = vector.extract_strided_slice %46 {offsets = [0, 64], sizes = [2, 64], strides = [1, 1]} : vector<2x192xf32> to vector<2x64xf32>
    %51 = vector.extract_strided_slice %46 {offsets = [0, 128], sizes = [2, 64], strides = [1, 1]} : vector<2x192xf32> to vector<2x64xf32>
    %52 = arith.mulf %50, %33 : vector<2x64xf32>
    %53 = arith.mulf %49, %48 : vector<2x64xf32>
    %54 = arith.addf %52, %53 : vector<2x64xf32>
    %55 = math.tanh %54 : vector<2x64xf32>
    %56 = arith.mulf %51, %55 : vector<2x64xf32>
    %c2_i32 = arith.constant 2 : i32
    %57 = arith.index_cast %c2_i32 : i32 to index
    %c0_19 = arith.constant 0 : index
    %c0_20 = arith.constant 0 : index
    %58 = vector.load %arg8[%57, %c0_19, %c0_20] : memref<8x2x256xf32, #tpu.memory_space<vmem>>, vector<1x2x256xf32>
    %59 = vector.shape_cast %58 : vector<1x2x256xf32> to vector<2x256xf32>
    %cst_21 = arith.constant dense<0.000000e+00> : vector<2x256xf32>
    %60 = tpu.matmul %56, %12, %cst_21 {dimension_numbers = #tpu.dot_dimension_numbers<[1], [0], [0], [1], [0, 0, 1, 1], [], []>} : vector<2x64xf32>, vector<64x256xf32>, vector<2x256xf32> -> vector<2x256xf32>
    %61 = arith.addf %59, %60 : vector<2x256xf32>
    %62 = vector.extract_strided_slice %61 {offsets = [0, 0], sizes = [2, 192], strides = [1, 1]} : vector<2x256xf32> to vector<2x192xf32>
    %63 = arith.negf %62 : vector<2x192xf32>
    %64 = math.exp %63 : vector<2x192xf32>
    %cst_22 = arith.constant 1.000000e+00 : f32
    %65 = vector.broadcast %cst_22 : f32 to vector<2x192xf32>
    %66 = arith.addf %65, %64 : vector<2x192xf32>
    %67 = arith.divf %65, %66 : vector<2x192xf32>
    %68 = vector.extract_strided_slice %61 {offsets = [0, 192], sizes = [2, 64], strides = [1, 1]} : vector<2x256xf32> to vector<2x64xf32>
    %69 = math.tanh %68 : vector<2x64xf32>
    %70 = vector.extract_strided_slice %67 {offsets = [0, 0], sizes = [2, 64], strides = [1, 1]} : vector<2x192xf32> to vector<2x64xf32>
    %71 = vector.extract_strided_slice %67 {offsets = [0, 64], sizes = [2, 64], strides = [1, 1]} : vector<2x192xf32> to vector<2x64xf32>
    %72 = vector.extract_strided_slice %67 {offsets = [0, 128], sizes = [2, 64], strides = [1, 1]} : vector<2x192xf32> to vector<2x64xf32>
    %73 = arith.mulf %71, %54 : vector<2x64xf32>
    %74 = arith.mulf %70, %69 : vector<2x64xf32>
    %75 = arith.addf %73, %74 : vector<2x64xf32>
    %76 = math.tanh %75 : vector<2x64xf32>
    %77 = arith.mulf %72, %76 : vector<2x64xf32>
    %c3_i32 = arith.constant 3 : i32
    %78 = arith.index_cast %c3_i32 : i32 to index
    %c0_23 = arith.constant 0 : index
    %c0_24 = arith.constant 0 : index
    %79 = vector.load %arg8[%78, %c0_23, %c0_24] : memref<8x2x256xf32, #tpu.memory_space<vmem>>, vector<1x2x256xf32>
    %80 = vector.shape_cast %79 : vector<1x2x256xf32> to vector<2x256xf32>
    %cst_25 = arith.constant dense<0.000000e+00> : vector<2x256xf32>
    %81 = tpu.matmul %77, %12, %cst_25 {dimension_numbers = #tpu.dot_dimension_numbers<[1], [0], [0], [1], [0, 0, 1, 1], [], []>} : vector<2x64xf32>, vector<64x256xf32>, vector<2x256xf32> -> vector<2x256xf32>
    %82 = arith.addf %80, %81 : vector<2x256xf32>
    %83 = vector.extract_strided_slice %82 {offsets = [0, 0], sizes = [2, 192], strides = [1, 1]} : vector<2x256xf32> to vector<2x192xf32>
    %84 = arith.negf %83 : vector<2x192xf32>
    %85 = math.exp %84 : vector<2x192xf32>
    %cst_26 = arith.constant 1.000000e+00 : f32
    %86 = vector.broadcast %cst_26 : f32 to vector<2x192xf32>
    %87 = arith.addf %86, %85 : vector<2x192xf32>
    %88 = arith.divf %86, %87 : vector<2x192xf32>
    %89 = vector.extract_strided_slice %82 {offsets = [0, 192], sizes = [2, 64], strides = [1, 1]} : vector<2x256xf32> to vector<2x64xf32>
    %90 = math.tanh %89 : vector<2x64xf32>
    %91 = vector.extract_strided_slice %88 {offsets = [0, 0], sizes = [2, 64], strides = [1, 1]} : vector<2x192xf32> to vector<2x64xf32>
    %92 = vector.extract_strided_slice %88 {offsets = [0, 64], sizes = [2, 64], strides = [1, 1]} : vector<2x192xf32> to vector<2x64xf32>
    %93 = vector.extract_strided_slice %88 {offsets = [0, 128], sizes = [2, 64], strides = [1, 1]} : vector<2x192xf32> to vector<2x64xf32>
    %94 = arith.mulf %92, %75 : vector<2x64xf32>
    %95 = arith.mulf %91, %90 : vector<2x64xf32>
    %96 = arith.addf %94, %95 : vector<2x64xf32>
    %97 = math.tanh %96 : vector<2x64xf32>
    %98 = arith.mulf %93, %97 : vector<2x64xf32>
    %c4_i32 = arith.constant 4 : i32
    %99 = arith.index_cast %c4_i32 : i32 to index
    %c0_27 = arith.constant 0 : index
    %c0_28 = arith.constant 0 : index
    %100 = vector.load %arg8[%99, %c0_27, %c0_28] : memref<8x2x256xf32, #tpu.memory_space<vmem>>, vector<1x2x256xf32>
    %101 = vector.shape_cast %100 : vector<1x2x256xf32> to vector<2x256xf32>
    %cst_29 = arith.constant dense<0.000000e+00> : vector<2x256xf32>
    %102 = tpu.matmul %98, %12, %cst_29 {dimension_numbers = #tpu.dot_dimension_numbers<[1], [0], [0], [1], [0, 0, 1, 1], [], []>} : vector<2x64xf32>, vector<64x256xf32>, vector<2x256xf32> -> vector<2x256xf32>
    %103 = arith.addf %101, %102 : vector<2x256xf32>
    %104 = vector.extract_strided_slice %103 {offsets = [0, 0], sizes = [2, 192], strides = [1, 1]} : vector<2x256xf32> to vector<2x192xf32>
    %105 = arith.negf %104 : vector<2x192xf32>
    %106 = math.exp %105 : vector<2x192xf32>
    %cst_30 = arith.constant 1.000000e+00 : f32
    %107 = vector.broadcast %cst_30 : f32 to vector<2x192xf32>
    %108 = arith.addf %107, %106 : vector<2x192xf32>
    %109 = arith.divf %107, %108 : vector<2x192xf32>
    %110 = vector.extract_strided_slice %103 {offsets = [0, 192], sizes = [2, 64], strides = [1, 1]} : vector<2x256xf32> to vector<2x64xf32>
    %111 = math.tanh %110 : vector<2x64xf32>
    %112 = vector.extract_strided_slice %109 {offsets = [0, 0], sizes = [2, 64], strides = [1, 1]} : vector<2x192xf32> to vector<2x64xf32>
    %113 = vector.extract_strided_slice %109 {offsets = [0, 64], sizes = [2, 64], strides = [1, 1]} : vector<2x192xf32> to vector<2x64xf32>
    %114 = vector.extract_strided_slice %109 {offsets = [0, 128], sizes = [2, 64], strides = [1, 1]} : vector<2x192xf32> to vector<2x64xf32>
    %115 = arith.mulf %113, %96 : vector<2x64xf32>
    %116 = arith.mulf %112, %111 : vector<2x64xf32>
    %117 = arith.addf %115, %116 : vector<2x64xf32>
    %118 = math.tanh %117 : vector<2x64xf32>
    %119 = arith.mulf %114, %118 : vector<2x64xf32>
    %c5_i32 = arith.constant 5 : i32
    %120 = arith.index_cast %c5_i32 : i32 to index
    %c0_31 = arith.constant 0 : index
    %c0_32 = arith.constant 0 : index
    %121 = vector.load %arg8[%120, %c0_31, %c0_32] : memref<8x2x256xf32, #tpu.memory_space<vmem>>, vector<1x2x256xf32>
    %122 = vector.shape_cast %121 : vector<1x2x256xf32> to vector<2x256xf32>
    %cst_33 = arith.constant dense<0.000000e+00> : vector<2x256xf32>
    %123 = tpu.matmul %119, %12, %cst_33 {dimension_numbers = #tpu.dot_dimension_numbers<[1], [0], [0], [1], [0, 0, 1, 1], [], []>} : vector<2x64xf32>, vector<64x256xf32>, vector<2x256xf32> -> vector<2x256xf32>
    %124 = arith.addf %122, %123 : vector<2x256xf32>
    %125 = vector.extract_strided_slice %124 {offsets = [0, 0], sizes = [2, 192], strides = [1, 1]} : vector<2x256xf32> to vector<2x192xf32>
    %126 = arith.negf %125 : vector<2x192xf32>
    %127 = math.exp %126 : vector<2x192xf32>
    %cst_34 = arith.constant 1.000000e+00 : f32
    %128 = vector.broadcast %cst_34 : f32 to vector<2x192xf32>
    %129 = arith.addf %128, %127 : vector<2x192xf32>
    %130 = arith.divf %128, %129 : vector<2x192xf32>
    %131 = vector.extract_strided_slice %124 {offsets = [0, 192], sizes = [2, 64], strides = [1, 1]} : vector<2x256xf32> to vector<2x64xf32>
    %132 = math.tanh %131 : vector<2x64xf32>
    %133 = vector.extract_strided_slice %130 {offsets = [0, 0], sizes = [2, 64], strides = [1, 1]} : vector<2x192xf32> to vector<2x64xf32>
    %134 = vector.extract_strided_slice %130 {offsets = [0, 64], sizes = [2, 64], strides = [1, 1]} : vector<2x192xf32> to vector<2x64xf32>
    %135 = vector.extract_strided_slice %130 {offsets = [0, 128], sizes = [2, 64], strides = [1, 1]} : vector<2x192xf32> to vector<2x64xf32>
    %136 = arith.mulf %134, %117 : vector<2x64xf32>
    %137 = arith.mulf %133, %132 : vector<2x64xf32>
    %138 = arith.addf %136, %137 : vector<2x64xf32>
    %139 = math.tanh %138 : vector<2x64xf32>
    %140 = arith.mulf %135, %139 : vector<2x64xf32>
    %c6_i32 = arith.constant 6 : i32
    %141 = arith.index_cast %c6_i32 : i32 to index
    %c0_35 = arith.constant 0 : index
    %c0_36 = arith.constant 0 : index
    %142 = vector.load %arg8[%141, %c0_35, %c0_36] : memref<8x2x256xf32, #tpu.memory_space<vmem>>, vector<1x2x256xf32>
    %143 = vector.shape_cast %142 : vector<1x2x256xf32> to vector<2x256xf32>
    %cst_37 = arith.constant dense<0.000000e+00> : vector<2x256xf32>
    %144 = tpu.matmul %140, %12, %cst_37 {dimension_numbers = #tpu.dot_dimension_numbers<[1], [0], [0], [1], [0, 0, 1, 1], [], []>} : vector<2x64xf32>, vector<64x256xf32>, vector<2x256xf32> -> vector<2x256xf32>
    %145 = arith.addf %143, %144 : vector<2x256xf32>
    %146 = vector.extract_strided_slice %145 {offsets = [0, 0], sizes = [2, 192], strides = [1, 1]} : vector<2x256xf32> to vector<2x192xf32>
    %147 = arith.negf %146 : vector<2x192xf32>
    %148 = math.exp %147 : vector<2x192xf32>
    %cst_38 = arith.constant 1.000000e+00 : f32
    %149 = vector.broadcast %cst_38 : f32 to vector<2x192xf32>
    %150 = arith.addf %149, %148 : vector<2x192xf32>
    %151 = arith.divf %149, %150 : vector<2x192xf32>
    %152 = vector.extract_strided_slice %145 {offsets = [0, 192], sizes = [2, 64], strides = [1, 1]} : vector<2x256xf32> to vector<2x64xf32>
    %153 = math.tanh %152 : vector<2x64xf32>
    %154 = vector.extract_strided_slice %151 {offsets = [0, 0], sizes = [2, 64], strides = [1, 1]} : vector<2x192xf32> to vector<2x64xf32>
    %155 = vector.extract_strided_slice %151 {offsets = [0, 64], sizes = [2, 64], strides = [1, 1]} : vector<2x192xf32> to vector<2x64xf32>
    %156 = vector.extract_strided_slice %151 {offsets = [0, 128], sizes = [2, 64], strides = [1, 1]} : vector<2x192xf32> to vector<2x64xf32>
    %157 = arith.mulf %155, %138 : vector<2x64xf32>
    %158 = arith.mulf %154, %153 : vector<2x64xf32>
    %159 = arith.addf %157, %158 : vector<2x64xf32>
    %160 = math.tanh %159 : vector<2x64xf32>
    %161 = arith.mulf %156, %160 : vector<2x64xf32>
    %c7_i32 = arith.constant 7 : i32
    %162 = arith.index_cast %c7_i32 : i32 to index
    %c0_39 = arith.constant 0 : index
    %c0_40 = arith.constant 0 : index
    %163 = vector.load %arg8[%162, %c0_39, %c0_40] : memref<8x2x256xf32, #tpu.memory_space<vmem>>, vector<1x2x256xf32>
    %164 = vector.shape_cast %163 : vector<1x2x256xf32> to vector<2x256xf32>
    %cst_41 = arith.constant dense<0.000000e+00> : vector<2x256xf32>
    %165 = tpu.matmul %161, %12, %cst_41 {dimension_numbers = #tpu.dot_dimension_numbers<[1], [0], [0], [1], [0, 0, 1, 1], [], []>} : vector<2x64xf32>, vector<64x256xf32>, vector<2x256xf32> -> vector<2x256xf32>
    %166 = arith.addf %164, %165 : vector<2x256xf32>
    %167 = vector.extract_strided_slice %166 {offsets = [0, 0], sizes = [2, 192], strides = [1, 1]} : vector<2x256xf32> to vector<2x192xf32>
    %168 = arith.negf %167 : vector<2x192xf32>
    %169 = math.exp %168 : vector<2x192xf32>
    %cst_42 = arith.constant 1.000000e+00 : f32
    %170 = vector.broadcast %cst_42 : f32 to vector<2x192xf32>
    %171 = arith.addf %170, %169 : vector<2x192xf32>
    %172 = arith.divf %170, %171 : vector<2x192xf32>
    %173 = vector.extract_strided_slice %166 {offsets = [0, 192], sizes = [2, 64], strides = [1, 1]} : vector<2x256xf32> to vector<2x64xf32>
    %174 = math.tanh %173 : vector<2x64xf32>
    %175 = vector.extract_strided_slice %172 {offsets = [0, 0], sizes = [2, 64], strides = [1, 1]} : vector<2x192xf32> to vector<2x64xf32>
    %176 = vector.extract_strided_slice %172 {offsets = [0, 64], sizes = [2, 64], strides = [1, 1]} : vector<2x192xf32> to vector<2x64xf32>
    %177 = vector.extract_strided_slice %172 {offsets = [0, 128], sizes = [2, 64], strides = [1, 1]} : vector<2x192xf32> to vector<2x64xf32>
    %178 = arith.mulf %176, %159 : vector<2x64xf32>
    %179 = arith.mulf %175, %174 : vector<2x64xf32>
    %180 = arith.addf %178, %179 : vector<2x64xf32>
    %181 = math.tanh %180 : vector<2x64xf32>
    %182 = arith.mulf %177, %181 : vector<2x64xf32>
    %c8_i32 = arith.constant 8 : i32
    %c0_43 = arith.constant 0 : index
    %c0_44 = arith.constant 0 : index
    %183 = vector.load %arg5[%c0_43, %c0_44] : memref<64x128xf32, #tpu.memory_space<vmem>>, vector<64x128xf32>
    %cst_45 = arith.constant dense<0.000000e+00> : vector<2x128xf32>
    %184 = tpu.matmul %182, %183, %cst_45 {dimension_numbers = #tpu.dot_dimension_numbers<[1], [0], [0], [1], [0, 0, 1, 1], [], []>} : vector<2x64xf32>, vector<64x128xf32>, vector<2x128xf32> -> vector<2x128xf32>
    %c0_46 = arith.constant 0 : index
    %c0_47 = arith.constant 0 : index
    %185 = vector.load %arg6[%c0_46, %c0_47] : memref<1x128xf32, #tpu.memory_space<vmem>>, vector<1x128xf32>
    %186 = vector.broadcast %185 : vector<1x128xf32> to vector<2x128xf32>
    %187 = arith.addf %184, %186 : vector<2x128xf32>
    %cst_48 = arith.constant 0.000000e+00 : f32
    %188 = vector.broadcast %cst_48 : f32 to vector<2x128xf32>
    %189 = arith.maximumf %187, %188 : vector<2x128xf32>
    %190 = arith.mulf %189, %189 : vector<2x128xf32>
    %cst_49 = arith.constant dense<0.000000e+00> : vector<2xf32>
    %191 = vector.multi_reduction <add>, %190, %cst_49 [1] : vector<2x128xf32> to vector<2xf32>
    %192 = vector.shape_cast %191 : vector<2xf32> to vector<2x1xf32>
    %193 = math.sqrt %192 : vector<2x1xf32>
    %cst_50 = arith.constant 9.99999993E-9 : f32
    %194 = vector.broadcast %cst_50 : f32 to vector<2x1xf32>
    %195 = arith.addf %193, %194 : vector<2x1xf32>
    %196 = tpu.reciprocal %195 : vector<2x1xf32> -> vector<2x1xf32>
    %197 = vector.broadcast %196 : vector<2x1xf32> to vector<2x128xf32>
    %198 = arith.mulf %189, %197 : vector<2x128xf32>
    %c0_51 = arith.constant 0 : index
    %c0_52 = arith.constant 0 : index
    %199 = vector.load %arg7[%c0_51, %c0_52] : memref<2x128xf32, #tpu.memory_space<vmem>>, vector<2x128xf32>
    tpu.vector_store %arg7[%c0_51, %c0_52], %198 {strides = array<i32>} : memref<2x128xf32, #tpu.memory_space<vmem>>, vector<2x128xf32>,
    return
  }
  func.func @transform_0(%arg0: i32) -> (i32, i32) {
    %c0_i32 = arith.constant 0 : i32
    %c0_i32_0 = arith.constant 0 : i32
    return %c0_i32, %arg0 : i32, i32
  }
  func.func @transform_1(%arg0: i32) -> (i32, i32) {
    %c0_i32 = arith.constant 0 : i32
    %c0_i32_0 = arith.constant 0 : i32
    %c0_i32_1 = arith.constant 0 : i32
    return %c0_i32, %c0_i32_0 : i32, i32
  }
  func.func @transform_2(%arg0: i32) -> (i32, i32) {
    %c0_i32 = arith.constant 0 : i32
    %c0_i32_0 = arith.constant 0 : i32
    %c0_i32_1 = arith.constant 0 : i32
    return %c0_i32, %c0_i32_0 : i32, i32
  }
  func.func @transform_3(%arg0: i32) -> (i32, i32) {
    %c0_i32 = arith.constant 0 : i32
    %c0_i32_0 = arith.constant 0 : i32
    %c0_i32_1 = arith.constant 0 : i32
    return %c0_i32, %c0_i32_0 : i32, i32
  }
  func.func @transform_4(%arg0: i32) -> (i32, i32) {
    %c0_i32 = arith.constant 0 : i32
    %c0_i32_0 = arith.constant 0 : i32
    %c0_i32_1 = arith.constant 0 : i32
    return %c0_i32, %c0_i32_0 : i32, i32
  }
  func.func @transform_5(%arg0: i32) -> (i32, i32) {
    %c0_i32 = arith.constant 0 : i32
    %c0_i32_0 = arith.constant 0 : i32
    %c0_i32_1 = arith.constant 0 : i32
    return %c0_i32, %c0_i32_0 : i32, i32
  }
  func.func @transform_6(%arg0: i32) -> (i32, i32) {
    %c0_i32 = arith.constant 0 : i32
    %c0_i32_0 = arith.constant 0 : i32
    return %arg0, %c0_i32 : i32, i32
  }
}

</mosaic_0001>

<bundles_post_ra>
// kernel: seq_regressor.1
= control target key start
LH: loop header
LB: loop body
LE: loop exit
PB: predicated region body
PF: predicated region fallthrough
CT: control target
= control target key end

     0   :  { %v28_v3 = vlaneseq  ;;  %s1539_s0 = inlined_call_operand.vmem [shape: f32[8,2], index: 0, kind: input, shape index: {}]   ;;  %s1540_s1 = inlined_call_operand.vmem [shape: f32[1,256], index: 1, kind: input, shape index: {}]   ;;  %s1541_s2 = inlined_call_operand.vmem [shape: f32[64,256], index: 2, kind: input, shape index: {}]   ;;  %s1542_s3 = inlined_call_operand.vmem [shape: f32[1,256], index: 3, kind: input, shape index: {}]   ;;  %s1543_s4 = inlined_call_operand.vmem [shape: f32[64,128], index: 4, kind: input, shape index: {}]   ;;  %s1544_s5 = inlined_call_operand.vmem [shape: f32[1,128], index: 5, kind: input, shape index: {}]   ;;  %s1545_s6 = inlined_call_operand.hbm [shape: f32[2,128], index: 6, kind: output, shape index: {}]  }
   0x1   :  { %v1176_v0 = vld [vmem:[%s1541_s2 + $0x78] sm:$0xff]  ;;  %v1181_v1 = vld [vmem:[%s1541_s2 + $0x70] sm:$0xff]  ;;  %v1186_v2 = vld [vmem:[%s1541_s2 + $0x68] sm:$0xff] }
   0x2   :  { %223 = vmatpush.msra.mxu1 %v1176_v0  ;;  %203 = vmatpush.msra.mxu0 %v1181_v1  ;;  %v1193_v4 = vld [vmem:[%s1541_s2 + $0x60] sm:$0xff]  ;;  %v1198_v5 = vld [vmem:[%s1541_s2 + $0x58] sm:$0xff]  ;;  %v1200_v6 = vshrl.u32 %v28_v3, 7  ;;  %v1205_v7 = vld [vmem:[%s1541_s2 + $0x50] sm:$0xff] }
   0x3   :  { %295 = vmatpush.msra.mxu2 %v1181_v1  ;;  %315 = vmatpush.msra.mxu3 %v1176_v0  ;;  %v1215_v8 = vld [vmem:[%s1541_s2 + $0x48] sm:$0xff]  ;;  %v1220_v9 = vld [vmem:[%s1541_s2 + $0x40] sm:$0xff]  ;;  %v1233_v11 = vld [vmem:[%s1541_s2 + $0x38] sm:$0xff] }
   0x4   :  { %224 = vmatpush.msra.mxu1 %v1186_v2  ;;  %204 = vmatpush.msra.mxu0 %v1193_v4  ;;  %v1228_v10 = vld [vmem:[%s1539_s0] sm:$0xff]  ;;  %v1238_v12 = vld [vmem:[%s1541_s2 + $0x30] sm:$0xff] }
   0x5   :  { %1037 = vset.pattern.permute.xlu0 %v1200_v6  ;;  %296 = vmatpush.msra.mxu2 %v1193_v4 }
   0x6   :  { %225 = vmatpush.msra.mxu1 %v1198_v5  ;;  %205 = vmatpush.msra.mxu0 %v1205_v7 }
   0x7   :  { %316 = vmatpush.msra.mxu3 %v1186_v2  ;;  %297 = vmatpush.msra.mxu2 %v1205_v7 }
   0x8   :  { %226 = vmatpush.msra.mxu1 %v1215_v8  ;;  %206 = vmatpush.msra.mxu0 %v1220_v9 }
   0x9   :  { %11 = vsyncpa [#allocation4], 0  ;;  %v1247_v13 = vld [vmem:[%s1541_s2 + $0x28] sm:$0xff]  ;;  %v1252_v14 = vld [vmem:[%s1541_s2 + $0x20] sm:$0xff]  ;;  %v27_v15 = vperm.slane %v1228_v10, 0  ;;  %317 = vmatpush.msra.mxu3 %v1198_v5  ;;  %298 = vmatpush.msra.mxu2 %v1220_v9  ;;  %v1135_v20 = vmov 0.0  }
   0xa   :  { %227 = vmatpush.msra.mxu1 %v1233_v11  ;;  %207 = vmatpush.msra.mxu0 %v1238_v12  ;;  %v1262_v16 = vld [vmem:[%s1541_s2 + $0x18] sm:$0xff]  ;;  %v1267_v17 = vld [vmem:[%s1541_s2 + $0x10] sm:$0xff]  ;;  %v1276_v18 = vld [vmem:[%s1541_s2 + $0x8] sm:$0xff]  ;;  %vm149_vm0 = vcmask 1041408   ;;  %v34_v61 = vperm.slane %v1228_v10, 1  ;;  %vm191_vm5 = vcmask 523264  }
   0xb   :  { %318 = vmatpush.msra.mxu3 %v1215_v8  ;;  %299 = vmatpush.msra.mxu2 %v1238_v12  ;;  %v1281_v19 = vld [vmem:[%s1541_s2] sm:$0xff]  ;;  %s1002_s27 = sshll.u32 %s1545_s6, 4  ;;  %s1003_s27 = int_to_ptr.hbm [resolvable:$true] %s1002_s27 }
   0xc   :  { %228 = vmatpush.msra.mxu1 %v1247_v13  ;;  %208 = vmatpush.msra.mxu0 %v1252_v14  ;;  %v25_v21 = vld [vmem:[%s1540_s1] sm:$0x3]  ;;  %s1136_s1 = smov 64  }
   0xd   :  { %32 = vperm.xlu0 %1037, %v27_v15   ;;  %319 = vmatpush.msra.mxu3 %v1233_v11  ;;  %v26_v22 = vld [vmem:[%s1542_s3] sm:$0x3]  ;;  %v1350_v23 = vperm.slane %v25_v21, 0  ;;  %v1352_v24 = vperm.slane %v25_v21, 1 }
   0xe   :  { %229 = vmatpush.msra.mxu1 %v1262_v16  ;;  %209 = vmatpush.msra.mxu0 %v1267_v17  ;;  %v1354_v25 = vperm.slane %v26_v22, 0  ;;  %v1356_v26 = vperm.slane %v26_v22, 1 }
   0xf   :  { %300 = vmatpush.msra.mxu2 %v1252_v14  ;;  %320 = vmatpush.msra.mxu3 %v1247_v13 }
  0x10   :  { %230 = vmatpush.msra.mxu1 %v1276_v18  ;;  %210 = vmatpush.msra.mxu0 %v1281_v19 }
  0x11   :  { %231 = vmatmul.f32.vlgmr.msra.gmra.mxu1 %v1135_v20  ;;  %211 = vmatmul.f32.vlgmr.msra.gmra.mxu0 %v1135_v20 }
  0x12   :  { %301 = vmatpush.msra.mxu2 %v1267_v17  ;;  %321 = vmatpush.msra.mxu3 %v1262_v16 }
  0x13   :  { %1038 = vset.pattern.permute.xlu2 %v1200_v6  ;;  %387 = vmatpush.msrb.mxu0 %v1181_v1 }
  0x14   :  { %302 = vmatpush.msra.mxu2 %v1281_v19  ;;  %322 = vmatpush.msra.mxu3 %v1276_v18 }
  0x15   :  { %407 = vmatpush.msrb.mxu1 %v1176_v0  ;;  %388 = vmatpush.msrb.mxu0 %v1193_v4 }
  0x16   :  { %479 = vmatpush.msrb.mxu2 %v1181_v1  ;;  %499 = vmatpush.msrb.mxu3 %v1176_v0 }
  0x17   :  { %408 = vmatpush.msrb.mxu1 %v1186_v2  ;;  %389 = vmatpush.msrb.mxu0 %v1205_v7 }
  0x18   :  { %480 = vmatpush.msrb.mxu2 %v1193_v4  ;;  %500 = vmatpush.msrb.mxu3 %v1186_v2 }
  0x19   :  { %409 = vmatpush.msrb.mxu1 %v1198_v5  ;;  %390 = vmatpush.msrb.mxu0 %v1220_v9 }
  0x1a   :  { %481 = vmatpush.msrb.mxu2 %v1205_v7  ;;  %501 = vmatpush.msrb.mxu3 %v1198_v5 }
  0x1b   :  { %410 = vmatpush.msrb.mxu1 %v1215_v8  ;;  %391 = vmatpush.msrb.mxu0 %v1238_v12 }
  0x1c   :  { %482 = vmatpush.msrb.mxu2 %v1220_v9  ;;  %502 = vmatpush.msrb.mxu3 %v1215_v8 }
  0x1d   :  { %411 = vmatpush.msrb.mxu1 %v1233_v11  ;;  %392 = vmatpush.msrb.mxu0 %v1252_v14 }
  0x1e   :  { %483 = vmatpush.msrb.mxu2 %v1238_v12  ;;  %503 = vmatpush.msrb.mxu3 %v1233_v11 }
  0x1f   :  { %412 = vmatpush.msrb.mxu1 %v1247_v13  ;;  %393 = vmatpush.msrb.mxu0 %v1267_v17 }
  0x20   :  { %484 = vmatpush.msrb.mxu2 %v1252_v14  ;;  %504 = vmatpush.msrb.mxu3 %v1247_v13 }
  0x21   :  { %413 = vmatpush.msrb.mxu1 %v1262_v16  ;;  %394 = vmatpush.msrb.mxu0 %v1281_v19 }
  0x22   :  { %485 = vmatpush.msrb.mxu2 %v1267_v17  ;;  %505 = vmatpush.msrb.mxu3 %v1262_v16 }
  0x23   :  { %414 = vmatpush.msrb.mxu1 %v1276_v18  ;;  %571 = vmatpush.msra.mxu0 %v1181_v1 }
  0x24   :  { %486 = vmatpush.msrb.mxu2 %v1281_v19  ;;  %506 = vmatpush.msrb.mxu3 %v1276_v18 }
  0x25   :  { %591 = vmatpush.msra.mxu1 %v1176_v0  ;;  %572 = vmatpush.msra.mxu0 %v1193_v4 }
  0x26   :  { %1039 = vset.pattern.permute.xlu1 %v1200_v6  ;;  %39 = vperm.xlu2 %1038, %v34_v61  }
  0x27   :  { %592 = vmatpush.msra.mxu1 %v1186_v2  ;;  %573 = vmatpush.msra.mxu0 %v1205_v7 }
  0x29   :  { %593 = vmatpush.msra.mxu1 %v1198_v5  ;;  %574 = vmatpush.msra.mxu0 %v1220_v9 }
  0x2b   :  { %594 = vmatpush.msra.mxu1 %v1215_v8  ;;  %575 = vmatpush.msra.mxu0 %v1238_v12 }
  0x2d   :  { %595 = vmatpush.msra.mxu1 %v1233_v11  ;;  %576 = vmatpush.msra.mxu0 %v1252_v14 }
  0x2f   :  { %596 = vmatpush.msra.mxu1 %v1247_v13  ;;  %577 = vmatpush.msra.mxu0 %v1267_v17 }
  0x31   :  { %597 = vmatpush.msra.mxu1 %v1262_v16  ;;  %578 = vmatpush.msra.mxu0 %v1281_v19 }
  0x33   :  { %598 = vmatpush.msra.mxu1 %v1276_v18 }
  0x7f   :  { %v33_v27 = vpop.permute.xlu0 %32 }
  0x80   :  { %v88_v28 = vmul.f32 %v1350_v23, %v33_v27  ;;  %v89_v29 = vmul.f32 %v1352_v24, %v33_v27  ;;  %v40_v6 = vpop.permute.xlu2 %39 }
  0x81   :  { %v90_v15 = vmul.f32 %v1350_v23, %v40_v6  ;;  %v91_v20 = vmul.f32 %v1352_v24, %v40_v6 }
  0x82   :  { %v109_v30 = vadd.f32 %v1354_v25, %v88_v28  ;;  %v110_v31 = vadd.f32 %v1356_v26, %v89_v29 }
  0x83   :  { %v111_v21 = vadd.f32 %v1354_v25, %v90_v15  ;;  %v112_v22 = vadd.f32 %v1356_v26, %v91_v20 }
  0x84   :  { %v141_v32 = vrot.slane %v110_v31, 6 }
  0x85   :  { %v142_v27 = vrot.slane %v112_v22, 6 }
  0x86   :  { %v150_v33 = vsel %vm149_vm0, %v109_v30, %v141_v32 }
  0x87   :  { %166 = vst [vmem:[#allocation2] sm:$0xf] %v150_v33  ;;  %v151_v28 = vsel %vm149_vm0, %v111_v21, %v142_v27 }
  0x88   :  { %167 = vst [vmem:[#allocation2 + $0x4] sm:$0xf] %v151_v28 }
  0x8e   :  { %v232_v34 = vpop.f32.mrf.mxu1  ;;  %v212_v35 = vpop.f32.mrf.mxu0  ;;  %v190_v37 = vld [vmem:[#allocation2] sm:$0xf] }
  0x8f   :  { %v237_v36 = vrot.slane %v232_v34, 6  ;;  %v283_v32 = vld [vmem:[#allocation2 + $0x4] sm:$0xf] }
  0x91   :  { %v238_v38 = vsel %vm149_vm0, %v212_v35, %v237_v36  ;;  %v41_v35 = vperm.slane %v1228_v10, 2 }
  0x92   :  { %v240_v39 = vadd.f32 %v238_v38, %v190_v37 }
  0x94   :  { %261 = vrot.lane.b32.xlu0 %v240_v39, %s1136_s1  ;;  %v1011_v40 = vmul.f32 -1.442695, %v240_v39 }
  0x96   :  { %1041 = vpow2.f32 %v1011_v40 }
  0x9c   :  { %v1042_v41 = vpop.eup %1041 }
  0x9d   :  { %v244_v42 = vadd.f32 1.0, %v1042_v41 }
  0x9f   :  { %1043 = vrcp.f32 %v244_v42  ;;  %v256_v50 = vand.u32 2147483648, %v244_v42  ;;  %vm250_vm2 = vweird.f32 %v244_v42  ;;  %v254_v51 = vand.u32 2147483647, %v244_v42 }
  0xa1   :  { %v257_v53 = vor.u32 1.1754944e-38, %v256_v50  ;;  %vm255_vm4 = vcmp.eq.f32.partialorder %v254_v51, 8.507059e+37 }
  0xa5   :  { %v1044_v43 = vpop.eup %1043 }
  0xa6   :  { %v246_v44 = vmul.f32 %v1044_v43, %v244_v42  ;;  %vm251_vm1 = vweird.f32 %v1044_v43 }
  0xa7   :  { %vm252_vm3 = vmor %vm250_vm2, %vm251_vm1 }
  0xa8   :  { %v247_v45 = vsub.f32 1.0, %v246_v44 }
  0xaa   :  { %v248_v46 = vmul.f32 %v1044_v43, %v247_v45 }
  0xac   :  { %v249_v49 = vadd.f32 %v1044_v43, %v248_v46 }
  0xae   :  { %v253_v52 = vsel %vm252_vm3, %v1044_v43, %v249_v49 }
  0xaf   :  { %v258_v55 = vsel %vm255_vm4, %v257_v53, %v253_v52 }
  0xb0   :  { %v266_v57 = vmul.f32 0.0, %v258_v55  ;;  %v275_v62 = vrot.slane %v258_v55, 2 }
 0x106   :  { %v262_v47 = vpop.permute.xlu0 %261 }
 0x107   :  { %v263_v48 = vrot.slane %v262_v47, 2 }
 0x109   :  { %1045 = vtanh.f32 %v263_v48 }
 0x10f   :  { %v1046_v54 = vpop.eup %1045 }
 0x110   :  { %v267_v56 = vmul.f32 %v1046_v54, %v258_v55 }
 0x112   :  { %269 = vrot.lane.b32.xlu1 %v267_v56, %s1136_s1 }
 0x184   :  { %v270_v58 = vpop.permute.xlu1 %269 }
 0x185   :  { %v1366_v59 = vadd.f32 %v270_v58, %v266_v57 }
 0x187   :  { %1047 = vtanh.f32 %v1366_v59 }
 0x18d   :  { %v1048_v60 = vpop.eup %1047 }
 0x18e   :  { %278 = vrot.lane.b32.xlu1 %v1048_v60, %s1136_s1 }
 0x200   :  { %v279_v63 = vpop.permute.xlu1 %278 }
 0x201   :  { %v281_v3 = vmul.f32 %v279_v63, %v275_v62 }
 0x203   :  { %1012 = vmatmul.msk.f32.vlgmr.msra.gmra.mxu2 %vm191_vm5, %v281_v3  ;;  %1013 = vmatmul.msk.f32.vlgmr.msra.gmra.mxu3 %vm191_vm5, %v281_v3 }
 0x204   :  { %663 = vmatpush.msra.mxu2 %v1181_v1  ;;  %683 = vmatpush.msra.mxu3 %v1176_v0 }
 0x206   :  { %664 = vmatpush.msra.mxu2 %v1193_v4  ;;  %684 = vmatpush.msra.mxu3 %v1186_v2 }
 0x208   :  { %665 = vmatpush.msra.mxu2 %v1205_v7  ;;  %685 = vmatpush.msra.mxu3 %v1198_v5 }
 0x20a   :  { %666 = vmatpush.msra.mxu2 %v1220_v9  ;;  %686 = vmatpush.msra.mxu3 %v1215_v8 }
 0x20c   :  { %667 = vmatpush.msra.mxu2 %v1238_v12  ;;  %687 = vmatpush.msra.mxu3 %v1233_v11 }
 0x20e   :  { %668 = vmatpush.msra.mxu2 %v1252_v14  ;;  %688 = vmatpush.msra.mxu3 %v1247_v13 }
 0x210   :  { %669 = vmatpush.msra.mxu2 %v1267_v17  ;;  %689 = vmatpush.msra.mxu3 %v1262_v16 }
 0x212   :  { %670 = vmatpush.msra.mxu2 %v1281_v19  ;;  %690 = vmatpush.msra.mxu3 %v1276_v18 }
 0x286   :  { %v324_v29 = vpop.f32.mrf.mxu3  ;;  %v304_v31 = vpop.f32.mrf.mxu2 }
 0x287   :  { %v329_v30 = vrot.slane %v324_v29, 6 }
 0x289   :  { %v330_v33 = vsel %vm149_vm0, %v304_v31, %v329_v30  ;;  %v48_v30 = vperm.slane %v1228_v10, 3 }
 0x28a   :  { %v332_v34 = vadd.f32 %v330_v33, %v283_v32 }
 0x28c   :  { %353 = vrot.lane.b32.xlu2 %v332_v34, %s1136_s1  ;;  %v1014_v36 = vmul.f32 -1.442695, %v332_v34 }
 0x28e   :  { %1049 = vpow2.f32 %v1014_v36 }
 0x294   :  { %46 = vperm.xlu2 %1038, %v41_v35   ;;  %v1050_v37 = vpop.eup %1049 }
 0x295   :  { %v336_v38 = vadd.f32 1.0, %v1050_v37 }
 0x297   :  { %1051 = vrcp.f32 %v336_v38  ;;  %v348_v46 = vand.u32 2147483648, %v336_v38  ;;  %vm342_vm7 = vweird.f32 %v336_v38  ;;  %v346_v47 = vand.u32 2147483647, %v336_v38 }
 0x299   :  { %v349_v49 = vor.u32 1.1754944e-38, %v348_v46  ;;  %vm347_vm9 = vcmp.eq.f32.partialorder %v346_v47, 8.507059e+37 }
 0x29d   :  { %v1052_v39 = vpop.eup %1051 }
 0x29e   :  { %v338_v40 = vmul.f32 %v1052_v39, %v336_v38  ;;  %vm343_vm6 = vweird.f32 %v1052_v39 }
 0x29f   :  { %vm344_vm8 = vmor %vm342_vm7, %vm343_vm6 }
 0x2a0   :  { %v339_v41 = vsub.f32 1.0, %v338_v40 }
 0x2a2   :  { %v340_v42 = vmul.f32 %v1052_v39, %v339_v41 }
 0x2a4   :  { %v341_v45 = vadd.f32 %v1052_v39, %v340_v42 }
 0x2a6   :  { %v345_v48 = vsel %vm344_vm8, %v1052_v39, %v341_v45 }
 0x2a7   :  { %v350_v54 = vsel %vm347_vm9, %v349_v49, %v345_v48 }
 0x2a8   :  { %v358_v61 = vmul.f32 %v350_v54, %v1366_v59  ;;  %v367_v6 = vrot.slane %v350_v54, 2 }
 0x2e6   :  { %v354_v43 = vpop.permute.xlu2 %353 }
 0x2e7   :  { %v355_v44 = vrot.slane %v354_v43, 2 }
 0x2e9   :  { %1053 = vtanh.f32 %v355_v44 }
 0x2ee   :  { %v47_v50 = vpop.permute.xlu2 %46 }
 0x2ef   :  { %v1054_v51 = vpop.eup %1053  ;;  %v92_v52 = vmul.f32 %v1350_v23, %v47_v50  ;;  %v93_v53 = vmul.f32 %v1352_v24, %v47_v50 }
 0x2f0   :  { %v359_v55 = vmul.f32 %v1054_v51, %v350_v54 }
 0x2f1   :  { %v114_v56 = vadd.f32 %v1356_v26, %v93_v53  ;;  %v113_v57 = vadd.f32 %v1354_v25, %v92_v52 }
 0x2f2   :  { %361 = vrot.lane.b32.xlu0 %v359_v55, %s1136_s1 }
 0x2f3   :  { %v143_v58 = vrot.slane %v114_v56, 6 }
 0x2f5   :  { %v152_v60 = vsel %vm149_vm0, %v113_v57, %v143_v58 }
 0x2f6   :  { %168 = vst [vmem:[#allocation2 + $0x8] sm:$0xf] %v152_v60 }
 0x2fd   :  { %v375_v27 = vld [vmem:[#allocation2 + $0x8] sm:$0xf] }
 0x364   :  { %v362_v62 = vpop.permute.xlu0 %361 }
 0x365   :  { %v1404_v63 = vadd.f32 %v362_v62, %v358_v61 }
 0x367   :  { %1055 = vtanh.f32 %v1404_v63 }
 0x36d   :  { %v1056_v3 = vpop.eup %1055 }
 0x36e   :  { %370 = vrot.lane.b32.xlu1 %v1056_v3, %s1136_s1 }
 0x3e0   :  { %v371_v15 = vpop.permute.xlu1 %370 }
 0x3e1   :  { %v373_v20 = vmul.f32 %v371_v15, %v367_v6 }
 0x3e3   :  { %1015 = vmatmul.msk.f32.vlgmr.msrb.gmra.mxu0 %vm191_vm5, %v373_v20  ;;  %1016 = vmatmul.msk.f32.vlgmr.msrb.gmra.mxu1 %vm191_vm5, %v373_v20 }
 0x3e4   :  { %755 = vmatpush.msrb.mxu0 %v1181_v1  ;;  %775 = vmatpush.msrb.mxu1 %v1176_v0 }
 0x3e6   :  { %756 = vmatpush.msrb.mxu0 %v1193_v4  ;;  %776 = vmatpush.msrb.mxu1 %v1186_v2 }
 0x3e8   :  { %757 = vmatpush.msrb.mxu0 %v1205_v7  ;;  %777 = vmatpush.msrb.mxu1 %v1198_v5 }
 0x3ea   :  { %758 = vmatpush.msrb.mxu0 %v1220_v9  ;;  %778 = vmatpush.msrb.mxu1 %v1215_v8 }
 0x3ec   :  { %759 = vmatpush.msrb.mxu0 %v1238_v12  ;;  %779 = vmatpush.msrb.mxu1 %v1233_v11 }
 0x3ee   :  { %760 = vmatpush.msrb.mxu0 %v1252_v14  ;;  %780 = vmatpush.msrb.mxu1 %v1247_v13 }
 0x3f0   :  { %761 = vmatpush.msrb.mxu0 %v1267_v17  ;;  %781 = vmatpush.msrb.mxu1 %v1262_v16 }
 0x3f2   :  { %762 = vmatpush.msrb.mxu0 %v1281_v19  ;;  %782 = vmatpush.msrb.mxu1 %v1276_v18 }
 0x460   :  { %v416_v59 = vpop.f32.mrf.mxu1  ;;  %v396_v22 = vpop.f32.mrf.mxu0 }
 0x461   :  { %v421_v21 = vrot.slane %v416_v59, 6 }
 0x463   :  { %v422_v28 = vsel %vm149_vm0, %v396_v22, %v421_v21  ;;  %v55_v22 = vperm.slane %v1228_v10, 4 }
 0x464   :  { %v424_v29 = vadd.f32 %v422_v28, %v375_v27 }
 0x466   :  { %445 = vrot.lane.b32.xlu0 %v424_v29, %s1136_s1  ;;  %v1017_v31 = vmul.f32 -1.442695, %v424_v29 }
 0x468   :  { %1057 = vpow2.f32 %v1017_v31 }
 0x46e   :  { %53 = vperm.xlu0 %1037, %v48_v30   ;;  %v1058_v32 = vpop.eup %1057 }
 0x46f   :  { %v428_v33 = vadd.f32 1.0, %v1058_v32 }
 0x471   :  { %1059 = vrcp.f32 %v428_v33  ;;  %v440_v41 = vand.u32 2147483648, %v428_v33  ;;  %vm434_vm11 = vweird.f32 %v428_v33  ;;  %v438_v42 = vand.u32 2147483647, %v428_v33 }
 0x473   :  { %v441_v44 = vor.u32 1.1754944e-38, %v440_v41  ;;  %vm439_vm13 = vcmp.eq.f32.partialorder %v438_v42, 8.507059e+37 }
 0x477   :  { %v1060_v34 = vpop.eup %1059 }
 0x478   :  { %v430_v35 = vmul.f32 %v1060_v34, %v428_v33  ;;  %vm435_vm10 = vweird.f32 %v1060_v34 }
 0x479   :  { %vm436_vm12 = vmor %vm434_vm11, %vm435_vm10 }
 0x47a   :  { %v431_v36 = vsub.f32 1.0, %v430_v35 }
 0x47c   :  { %v432_v37 = vmul.f32 %v1060_v34, %v431_v36 }
 0x47e   :  { %v433_v40 = vadd.f32 %v1060_v34, %v432_v37 }
 0x480   :  { %v437_v43 = vsel %vm436_vm12, %v1060_v34, %v433_v40 }
 0x481   :  { %v442_v49 = vsel %vm439_vm13, %v441_v44, %v437_v43 }
 0x482   :  { %v450_v55 = vmul.f32 %v442_v49, %v1404_v63  ;;  %v459_v60 = vrot.slane %v442_v49, 2 }
 0x4d8   :  { %v446_v38 = vpop.permute.xlu0 %445 }
 0x4d9   :  { %v447_v39 = vrot.slane %v446_v38, 2 }
 0x4db   :  { %1061 = vtanh.f32 %v447_v39 }
 0x4e0   :  { %v54_v45 = vpop.permute.xlu0 %53 }
 0x4e1   :  { %v1062_v46 = vpop.eup %1061  ;;  %v94_v47 = vmul.f32 %v1350_v23, %v54_v45  ;;  %v95_v48 = vmul.f32 %v1352_v24, %v54_v45 }
 0x4e2   :  { %v451_v50 = vmul.f32 %v1062_v46, %v442_v49 }
 0x4e3   :  { %v116_v51 = vadd.f32 %v1356_v26, %v95_v48  ;;  %v115_v52 = vadd.f32 %v1354_v25, %v94_v47  ;;  %v62_v47 = vperm.slane %v1228_v10, 5 }
 0x4e4   :  { %453 = vrot.lane.b32.xlu1 %v451_v50, %s1136_s1 }
 0x4e5   :  { %v144_v53 = vrot.slane %v116_v51, 6 }
 0x4e7   :  { %v153_v54 = vsel %vm149_vm0, %v115_v52, %v144_v53 }
 0x4e8   :  { %169 = vst [vmem:[#allocation2 + $0xc] sm:$0xf] %v153_v54 }
 0x556   :  { %v454_v56 = vpop.permute.xlu1 %453 }
 0x557   :  { %v456_v57 = vadd.f32 %v454_v56, %v450_v55 }
 0x559   :  { %1063 = vtanh.f32 %v456_v57 }
 0x55f   :  { %v1064_v58 = vpop.eup %1063 }
 0x560   :  { %462 = vrot.lane.b32.xlu2 %v1064_v58, %s1136_s1 }
 0x5ba   :  { %v463_v61 = vpop.permute.xlu2 %462 }
 0x5bb   :  { %v465_v62 = vmul.f32 %v463_v61, %v459_v60 }
 0x5bd   :  { %1018 = vmatmul.msk.f32.vlgmr.msrb.gmra.mxu2 %vm191_vm5, %v465_v62  ;;  %1019 = vmatmul.msk.f32.vlgmr.msrb.gmra.mxu3 %vm191_vm5, %v465_v62 }
 0x5be   :  { %847 = vmatpush.msrb.mxu2 %v1181_v1  ;;  %867 = vmatpush.msrb.mxu3 %v1176_v0 }
 0x5c0   :  { %848 = vmatpush.msrb.mxu2 %v1193_v4  ;;  %868 = vmatpush.msrb.mxu3 %v1186_v2  ;;  %v467_v4 = vld [vmem:[#allocation2 + $0xc] sm:$0xf] }
 0x5c2   :  { %849 = vmatpush.msrb.mxu2 %v1205_v7  ;;  %869 = vmatpush.msrb.mxu3 %v1198_v5 }
 0x5c4   :  { %850 = vmatpush.msrb.mxu2 %v1220_v9  ;;  %870 = vmatpush.msrb.mxu3 %v1215_v8 }
 0x5c6   :  { %851 = vmatpush.msrb.mxu2 %v1238_v12  ;;  %871 = vmatpush.msrb.mxu3 %v1233_v11 }
 0x5c8   :  { %852 = vmatpush.msrb.mxu2 %v1252_v14  ;;  %872 = vmatpush.msrb.mxu3 %v1247_v13 }
 0x5ca   :  { %853 = vmatpush.msrb.mxu2 %v1267_v17  ;;  %873 = vmatpush.msrb.mxu3 %v1262_v16 }
 0x5cc   :  { %854 = vmatpush.msrb.mxu2 %v1281_v19  ;;  %874 = vmatpush.msrb.mxu3 %v1276_v18 }
 0x640   :  { %v508_v0 = vpop.f32.mrf.mxu3  ;;  %v488_v2 = vpop.f32.mrf.mxu2 }
 0x641   :  { %v513_v1 = vrot.slane %v508_v0, 6 }
 0x643   :  { %v514_v5 = vsel %vm149_vm0, %v488_v2, %v513_v1 }
 0x644   :  { %v516_v7 = vadd.f32 %v514_v5, %v467_v4 }
 0x646   :  { %537 = vrot.lane.b32.xlu1 %v516_v7, %s1136_s1  ;;  %v1020_v8 = vmul.f32 -1.442695, %v516_v7 }
 0x648   :  { %1065 = vpow2.f32 %v1020_v8 }
 0x64e   :  { %v1066_v9 = vpop.eup %1065  ;;  %60 = vperm.xlu1 %1039, %v55_v22   ;;  %v69_v22 = vperm.slane %v1228_v10, 6 }
 0x64f   :  { %v520_v11 = vadd.f32 1.0, %v1066_v9 }
 0x651   :  { %1067 = vrcp.f32 %v520_v11  ;;  %v532_v63 = vand.u32 2147483648, %v520_v11  ;;  %vm526_vm15 = vweird.f32 %v520_v11  ;;  %v530_v3 = vand.u32 2147483647, %v520_v11 }
 0x653   :  { %v533_v15 = vor.u32 1.1754944e-38, %v532_v63  ;;  %vm531_vm2 = vcmp.eq.f32.partialorder %v530_v3, 8.507059e+37 }
 0x657   :  { %v1068_v12 = vpop.eup %1067 }
 0x658   :  { %v522_v13 = vmul.f32 %v1068_v12, %v520_v11  ;;  %vm527_vm14 = vweird.f32 %v1068_v12 }
 0x659   :  { %vm528_vm1 = vmor %vm526_vm15, %vm527_vm14 }
 0x65a   :  { %v523_v14 = vsub.f32 1.0, %v522_v13 }
 0x65c   :  { %v524_v16 = vmul.f32 %v1068_v12, %v523_v14 }
 0x65e   :  { %v525_v19 = vadd.f32 %v1068_v12, %v524_v16 }
 0x660   :  { %v529_v6 = vsel %vm528_vm1, %v1068_v12, %v525_v19 }
 0x661   :  { %v534_v59 = vsel %vm531_vm2, %v533_v15, %v529_v6 }
 0x662   :  { %v542_v27 = vmul.f32 %v534_v59, %v456_v57  ;;  %v551_v38 = vrot.slane %v534_v59, 2 }
 0x6b8   :  { %v538_v17 = vpop.permute.xlu1 %537 }
 0x6b9   :  { %v539_v18 = vrot.slane %v538_v17, 2 }
 0x6bb   :  { %1069 = vtanh.f32 %v539_v18 }
 0x6c0   :  { %v61_v31 = vpop.permute.xlu1 %60 }
 0x6c1   :  { %v1070_v20 = vpop.eup %1069  ;;  %v96_v32 = vmul.f32 %v1350_v23, %v61_v31  ;;  %v97_v33 = vmul.f32 %v1352_v24, %v61_v31 }
 0x6c2   :  { %v543_v21 = vmul.f32 %v1070_v20, %v534_v59 }
 0x6c3   :  { %v117_v34 = vadd.f32 %v1354_v25, %v96_v32  ;;  %v118_v35 = vadd.f32 %v1356_v26, %v97_v33 }
 0x6c4   :  { %545 = vrot.lane.b32.xlu2 %v543_v21, %s1136_s1 }
 0x6c5   :  { %v145_v36 = vrot.slane %v118_v35, 6 }
 0x6c7   :  { %v154_v37 = vsel %vm149_vm0, %v117_v34, %v145_v36 }
 0x6c8   :  { %170 = vst [vmem:[#allocation2 + $0x10] sm:$0xf] %v154_v37 }
 0x6cf   :  { %v559_v44 = vld [vmem:[#allocation2 + $0x10] sm:$0xf] }
 0x71e   :  { %v546_v28 = vpop.permute.xlu2 %545 }
 0x71f   :  { %v548_v29 = vadd.f32 %v546_v28, %v542_v27 }
 0x721   :  { %1071 = vtanh.f32 %v548_v29 }
 0x727   :  { %v1072_v30 = vpop.eup %1071 }
 0x728   :  { %554 = vrot.lane.b32.xlu0 %v1072_v30, %s1136_s1 }
 0x79a   :  { %v555_v39 = vpop.permute.xlu0 %554 }
 0x79b   :  { %v557_v40 = vmul.f32 %v555_v39, %v551_v38 }
 0x79d   :  { %1021 = vmatmul.msk.f32.vlgmr.msra.gmra.mxu0 %vm191_vm5, %v557_v40  ;;  %1022 = vmatmul.msk.f32.vlgmr.msra.gmra.mxu1 %vm191_vm5, %v557_v40 }
 0x81a   :  { %v600_v41 = vpop.f32.mrf.mxu1  ;;  %v580_v43 = vpop.f32.mrf.mxu0 }
 0x81b   :  { %v605_v42 = vrot.slane %v600_v41, 6 }
 0x81d   :  { %v606_v45 = vsel %vm149_vm0, %v580_v43, %v605_v42 }
 0x81e   :  { %v608_v46 = vadd.f32 %v606_v45, %v559_v44 }
 0x820   :  { %629 = vrot.lane.b32.xlu2 %v608_v46, %s1136_s1  ;;  %v1023_v48 = vmul.f32 -1.442695, %v608_v46 }
 0x822   :  { %1073 = vpow2.f32 %v1023_v48 }
 0x828   :  { %67 = vperm.xlu2 %1038, %v62_v47   ;;  %v1074_v49 = vpop.eup %1073 }
 0x829   :  { %v612_v50 = vadd.f32 1.0, %v1074_v49 }
 0x82b   :  { %1075 = vrcp.f32 %v612_v50  ;;  %v624_v58 = vand.u32 2147483648, %v612_v50  ;;  %vm618_vm4 = vweird.f32 %v612_v50  ;;  %v622_v60 = vand.u32 2147483647, %v612_v50 }
 0x82d   :  { %v625_v62 = vor.u32 1.1754944e-38, %v624_v58  ;;  %vm623_vm7 = vcmp.eq.f32.partialorder %v622_v60, 8.507059e+37 }
 0x831   :  { %v1076_v51 = vpop.eup %1075 }
 0x832   :  { %v614_v52 = vmul.f32 %v1076_v51, %v612_v50  ;;  %vm619_vm3 = vweird.f32 %v1076_v51 }
 0x833   :  { %vm620_vm6 = vmor %vm618_vm4, %vm619_vm3 }
 0x834   :  { %v615_v53 = vsub.f32 1.0, %v614_v52 }
 0x836   :  { %v616_v54 = vmul.f32 %v1076_v51, %v615_v53 }
 0x838   :  { %v617_v57 = vadd.f32 %v1076_v51, %v616_v54 }
 0x83a   :  { %v621_v61 = vsel %vm620_vm6, %v1076_v51, %v617_v57 }
 0x83b   :  { %v626_v5 = vsel %vm623_vm7, %v625_v62, %v621_v61 }
 0x83c   :  { %v634_v13 = vmul.f32 %v626_v5, %v548_v29  ;;  %v643_v18 = vrot.slane %v626_v5, 2 }
 0x87a   :  { %v630_v55 = vpop.permute.xlu2 %629 }
 0x87b   :  { %v631_v56 = vrot.slane %v630_v55, 2 }
 0x87d   :  { %1077 = vtanh.f32 %v631_v56 }
 0x882   :  { %v68_v0 = vpop.permute.xlu2 %67 }
 0x883   :  { %v1078_v1 = vpop.eup %1077  ;;  %v98_v2 = vmul.f32 %v1350_v23, %v68_v0  ;;  %v99_v4 = vmul.f32 %v1352_v24, %v68_v0 }
 0x884   :  { %v635_v7 = vmul.f32 %v1078_v1, %v626_v5 }
 0x885   :  { %v120_v8 = vadd.f32 %v1356_v26, %v99_v4  ;;  %v119_v9 = vadd.f32 %v1354_v25, %v98_v2  ;;  %v76_v2 = vperm.slane %v1228_v10, 7 }
 0x886   :  { %637 = vrot.lane.b32.xlu0 %v635_v7, %s1136_s1 }
 0x887   :  { %v146_v11 = vrot.slane %v120_v8, 6 }
 0x889   :  { %v155_v12 = vsel %vm149_vm0, %v119_v9, %v146_v11 }
 0x88a   :  { %171 = vst [vmem:[#allocation2 + $0x14] sm:$0xf] %v155_v12 }
 0x891   :  { %v651_v20 = vld [vmem:[#allocation2 + $0x14] sm:$0xf] }
 0x8f8   :  { %v638_v14 = vpop.permute.xlu0 %637 }
 0x8f9   :  { %v640_v16 = vadd.f32 %v638_v14, %v634_v13 }
 0x8fb   :  { %1079 = vtanh.f32 %v640_v16 }
 0x901   :  { %v1080_v17 = vpop.eup %1079 }
 0x902   :  { %646 = vrot.lane.b32.xlu1 %v1080_v17, %s1136_s1 }
 0x974   :  { %v647_v19 = vpop.permute.xlu1 %646 }
 0x975   :  { %v649_v63 = vmul.f32 %v647_v19, %v643_v18 }
 0x977   :  { %1024 = vmatmul.msk.f32.vlgmr.msra.gmra.mxu2 %vm191_vm5, %v649_v63  ;;  %1025 = vmatmul.msk.f32.vlgmr.msra.gmra.mxu3 %vm191_vm5, %v649_v63 }
 0x9fa   :  { %v692_v3 = vpop.f32.mrf.mxu3  ;;  %v672_v15 = vpop.f32.mrf.mxu2 }
 0x9fb   :  { %v697_v6 = vrot.slane %v692_v3, 6 }
 0x9fd   :  { %v698_v59 = vsel %vm149_vm0, %v672_v15, %v697_v6 }
 0x9fe   :  { %v700_v21 = vadd.f32 %v698_v59, %v651_v20 }
 0xa00   :  { %721 = vrot.lane.b32.xlu0 %v700_v21, %s1136_s1  ;;  %v1026_v27 = vmul.f32 -1.442695, %v700_v21 }
 0xa02   :  { %1081 = vpow2.f32 %v1026_v27 }
 0xa08   :  { %74 = vperm.xlu0 %1037, %v69_v22   ;;  %v1082_v28 = vpop.eup %1081 }
 0xa09   :  { %v704_v29 = vadd.f32 1.0, %v1082_v28 }
 0xa0b   :  { %1083 = vrcp.f32 %v704_v29  ;;  %v716_v37 = vand.u32 2147483648, %v704_v29  ;;  %vm710_vm9 = vweird.f32 %v704_v29  ;;  %v714_v38 = vand.u32 2147483647, %v704_v29 }
 0xa0d   :  { %v717_v40 = vor.u32 1.1754944e-38, %v716_v37  ;;  %vm715_vm11 = vcmp.eq.f32.partialorder %v714_v38, 8.507059e+37 }
 0xa11   :  { %v1084_v30 = vpop.eup %1083 }
 0xa12   :  { %v706_v31 = vmul.f32 %v1084_v30, %v704_v29  ;;  %vm711_vm8 = vweird.f32 %v1084_v30 }
 0xa13   :  { %vm712_vm10 = vmor %vm710_vm9, %vm711_vm8 }
 0xa14   :  { %v707_v32 = vsub.f32 1.0, %v706_v31 }
 0xa16   :  { %v708_v33 = vmul.f32 %v1084_v30, %v707_v32 }
 0xa18   :  { %v709_v36 = vadd.f32 %v1084_v30, %v708_v33 }
 0xa1a   :  { %v713_v39 = vsel %vm712_vm10, %v1084_v30, %v709_v36 }
 0xa1b   :  { %v718_v45 = vsel %vm715_vm11, %v717_v40, %v713_v39 }
 0xa1c   :  { %v726_v51 = vmul.f32 %v718_v45, %v640_v16  ;;  %v735_v55 = vrot.slane %v718_v45, 2 }
 0xa72   :  { %v722_v34 = vpop.permute.xlu0 %721 }
 0xa73   :  { %v723_v35 = vrot.slane %v722_v34, 2 }
 0xa75   :  { %1085 = vtanh.f32 %v723_v35 }
 0xa7a   :  { %v75_v41 = vpop.permute.xlu0 %74 }
 0xa7b   :  { %v1086_v42 = vpop.eup %1085  ;;  %v100_v43 = vmul.f32 %v1350_v23, %v75_v41  ;;  %v101_v44 = vmul.f32 %v1352_v24, %v75_v41 }
 0xa7c   :  { %v727_v46 = vmul.f32 %v1086_v42, %v718_v45 }
 0xa7d   :  { %v122_v47 = vadd.f32 %v1356_v26, %v101_v44  ;;  %v121_v48 = vadd.f32 %v1354_v25, %v100_v43 }
 0xa7e   :  { %729 = vrot.lane.b32.xlu1 %v727_v46, %s1136_s1 }
 0xa7f   :  { %v147_v49 = vrot.slane %v122_v47, 6 }
 0xa81   :  { %v156_v50 = vsel %vm149_vm0, %v121_v48, %v147_v49 }
 0xa82   :  { %172 = vst [vmem:[#allocation2 + $0x18] sm:$0xf] %v156_v50 }
 0xa89   :  { %v743_v0 = vld [vmem:[#allocation2 + $0x18] sm:$0xf] }
 0xaf0   :  { %v730_v52 = vpop.permute.xlu1 %729 }
 0xaf1   :  { %v732_v53 = vadd.f32 %v730_v52, %v726_v51 }
 0xaf3   :  { %1087 = vtanh.f32 %v732_v53 }
 0xaf9   :  { %v1088_v54 = vpop.eup %1087 }
 0xafa   :  { %738 = vrot.lane.b32.xlu2 %v1088_v54, %s1136_s1 }
 0xb54   :  { %v739_v56 = vpop.permute.xlu2 %738 }
 0xb55   :  { %v741_v57 = vmul.f32 %v739_v56, %v735_v55  ;;  %v933_v55 = vld [vmem:[%s1543_s4 + $0x38] sm:$0xff]  ;;  %v932_v56 = vld [vmem:[%s1543_s4 + $0x30] sm:$0xff] }
 0xb56   :  { %949 = vmatpush.msra.mxu0 %v933_v55 }
 0xb57   :  { %1027 = vmatmul.msk.f32.vlgmr.msrb.gmra.mxu0 %vm191_vm5, %v741_v57  ;;  %1028 = vmatmul.msk.f32.vlgmr.msrb.gmra.mxu1 %vm191_vm5, %v741_v57  ;;  %v931_v57 = vld [vmem:[%s1543_s4 + $0x28] sm:$0xff] }
 0xb58   :  { %950 = vmatpush.msra.mxu0 %v932_v56 }
 0xb5a   :  { %951 = vmatpush.msra.mxu0 %v931_v57 }
 0xbd4   :  { %v784_v58 = vpop.f32.mrf.mxu1  ;;  %v764_v61 = vpop.f32.mrf.mxu0 }
 0xbd5   :  { %v789_v60 = vrot.slane %v784_v58, 6  ;;  %v930_v58 = vld [vmem:[%s1543_s4 + $0x20] sm:$0xff] }
 0xbd6   :  { %952 = vmatpush.msra.mxu0 %v930_v58 }
 0xbd7   :  { %v790_v62 = vsel %vm149_vm0, %v764_v61, %v789_v60  ;;  %v929_v60 = vld [vmem:[%s1543_s4 + $0x18] sm:$0xff]  ;;  %v928_v61 = vld [vmem:[%s1543_s4 + $0x10] sm:$0xff] }
 0xbd8   :  { %v792_v1 = vadd.f32 %v790_v62, %v743_v0  ;;  %953 = vmatpush.msra.mxu0 %v929_v60  ;;  %v927_v62 = vld [vmem:[%s1543_s4 + $0x8] sm:$0xff] }
 0xbda   :  { %813 = vrot.lane.b32.xlu1 %v792_v1, %s1136_s1  ;;  %v1029_v4 = vmul.f32 -1.442695, %v792_v1  ;;  %954 = vmatpush.msra.mxu0 %v928_v61 }
 0xbdc   :  { %1089 = vpow2.f32 %v1029_v4  ;;  %955 = vmatpush.msra.mxu0 %v927_v62 }
 0xbe2   :  { %81 = vperm.xlu1 %1039, %v76_v2   ;;  %v1090_v5 = vpop.eup %1089 }
 0xbe3   :  { %v796_v7 = vadd.f32 1.0, %v1090_v5  ;;  %v926_v5 = vld [vmem:[%s1543_s4] sm:$0xff]  ;;  %s1137_s4 = smov [#allocation3]  }
 0xbe4   :  { %956 = vmatpush.msra.mxu0 %v926_v5 }
 0xbe5   :  { %1091 = vrcp.f32 %v796_v7  ;;  %v808_v17 = vand.u32 2147483648, %v796_v7  ;;  %vm802_vm13 = vweird.f32 %v796_v7  ;;  %v806_v18 = vand.u32 2147483647, %v796_v7 }
 0xbe7   :  { %v809_v19 = vor.u32 1.1754944e-38, %v808_v17  ;;  %vm807_vm15 = vcmp.eq.f32.partialorder %v806_v18, 8.507059e+37 }
 0xbeb   :  { %v1092_v8 = vpop.eup %1091 }
 0xbec   :  { %v798_v9 = vmul.f32 %v1092_v8, %v796_v7  ;;  %vm803_vm12 = vweird.f32 %v1092_v8 }
 0xbed   :  { %vm804_vm14 = vmor %vm802_vm13, %vm803_vm12 }
 0xbee   :  { %v799_v11 = vsub.f32 1.0, %v798_v9 }
 0xbf0   :  { %v800_v12 = vmul.f32 %v1092_v8, %v799_v11  ;;  %v1040_v11 = vld [vmem:[%s1544_s5] ss:$0 sm:$0xff]  ;;  %s1000_s5 = sshll.u32 %s1137_s4, 4  ;;  %s1001_s5 = int_to_ptr.vmem [resolvable:$true] %s1000_s5 }
 0xbf2   :  { %v801_v16 = vadd.f32 %v1092_v8, %v800_v12 }
 0xbf4   :  { %v805_v10 = vsel %vm804_vm14, %v1092_v8, %v801_v16 }
 0xbf5   :  { %v810_v20 = vsel %vm807_vm15, %v809_v19, %v805_v10 }
 0xbf6   :  { %v818_v29 = vmul.f32 %v810_v20, %v732_v53 }
 0xc4c   :  { %v814_v13 = vpop.permute.xlu1 %813 }
 0xc4d   :  { %v815_v14 = vrot.slane %v814_v13, 2 }
 0xc4f   :  { %1093 = vtanh.f32 %v815_v14 }
 0xc54   :  { %v82_v63 = vpop.permute.xlu1 %81 }
 0xc55   :  { %v1094_v3 = vpop.eup %1093  ;;  %v102_v6 = vmul.f32 %v1350_v23, %v82_v63  ;;  %v103_v15 = vmul.f32 %v1352_v24, %v82_v63  ;;  %v827_v23 = vrot.slane %v810_v20, 2 }
 0xc56   :  { %v819_v59 = vmul.f32 %v1094_v3, %v810_v20 }
 0xc57   :  { %v124_v21 = vadd.f32 %v1356_v26, %v103_v15  ;;  %v123_v22 = vadd.f32 %v1354_v25, %v102_v6 }
 0xc58   :  { %821 = vrot.lane.b32.xlu2 %v819_v59, %s1136_s1 }
 0xc59   :  { %v148_v27 = vrot.slane %v124_v21, 6 }
 0xc5b   :  { %v157_v28 = vsel %vm149_vm0, %v123_v22, %v148_v27 }
 0xc5c   :  { %173 = vst [vmem:[#allocation2 + $0x1c] sm:$0xf] %v157_v28 }
 0xc63   :  { %v835_v36 = vld [vmem:[#allocation2 + $0x1c] sm:$0xf] }
 0xcb2   :  { %v822_v30 = vpop.permute.xlu2 %821 }
 0xcb3   :  { %v824_v31 = vadd.f32 %v822_v30, %v818_v29 }
 0xcb5   :  { %1095 = vtanh.f32 %v824_v31 }
 0xcbb   :  { %v1096_v32 = vpop.eup %1095 }
 0xcbc   :  { %830 = vrot.lane.b32.xlu0 %v1096_v32, %s1136_s1 }
 0xd2e   :  { %v831_v24 = vpop.permute.xlu0 %830 }
 0xd2f   :  { %v833_v33 = vmul.f32 %v831_v24, %v827_v23 }
 0xd31   :  { %1030 = vmatmul.msk.f32.vlgmr.msrb.gmra.mxu2 %vm191_vm5, %v833_v33  ;;  %1031 = vmatmul.msk.f32.vlgmr.msrb.gmra.mxu3 %vm191_vm5, %v833_v33 }
 0xdb4   :  { %v876_v26 = vpop.f32.mrf.mxu3  ;;  %v856_v34 = vpop.f32.mrf.mxu2 }
 0xdb5   :  { %v881_v25 = vrot.slane %v876_v26, 6 }
 0xdb7   :  { %v882_v35 = vsel %vm149_vm0, %v856_v34, %v881_v25 }
 0xdb8   :  { %v884_v37 = vadd.f32 %v882_v35, %v835_v36 }
 0xdba   :  { %905 = vrot.lane.b32.xlu2 %v884_v37, %s1136_s1  ;;  %v1032_v38 = vmul.f32 -1.442695, %v884_v37 }
 0xdbc   :  { %1097 = vpow2.f32 %v1032_v38 }
 0xdc2   :  { %v1098_v39 = vpop.eup %1097 }
 0xdc3   :  { %v888_v40 = vadd.f32 1.0, %v1098_v39 }
 0xdc5   :  { %1099 = vrcp.f32 %v888_v40  ;;  %v900_v48 = vand.u32 2147483648, %v888_v40  ;;  %vm894_vm2 = vweird.f32 %v888_v40  ;;  %v898_v49 = vand.u32 2147483647, %v888_v40 }
 0xdc7   :  { %v901_v51 = vor.u32 1.1754944e-38, %v900_v48  ;;  %vm899_vm4 = vcmp.eq.f32.partialorder %v898_v49, 8.507059e+37 }
 0xdcb   :  { %v1100_v41 = vpop.eup %1099 }
 0xdcc   :  { %v890_v42 = vmul.f32 %v1100_v41, %v888_v40  ;;  %vm895_vm1 = vweird.f32 %v1100_v41 }
 0xdcd   :  { %vm896_vm3 = vmor %vm894_vm2, %vm895_vm1 }
 0xdce   :  { %v891_v43 = vsub.f32 1.0, %v890_v42 }
 0xdd0   :  { %v892_v44 = vmul.f32 %v1100_v41, %v891_v43 }
 0xdd2   :  { %v893_v47 = vadd.f32 %v1100_v41, %v892_v44 }
 0xdd4   :  { %v897_v50 = vsel %vm896_vm3, %v1100_v41, %v893_v47 }
 0xdd5   :  { %v902_v53 = vsel %vm899_vm4, %v901_v51, %v897_v50 }
 0xdd6   :  { %v910_v0 = vmul.f32 %v902_v53, %v824_v31  ;;  %v919_v7 = vrot.slane %v902_v53, 2 }
 0xe14   :  { %v906_v45 = vpop.permute.xlu2 %905 }
 0xe15   :  { %v907_v46 = vrot.slane %v906_v45, 2 }
 0xe17   :  { %1101 = vtanh.f32 %v907_v46 }
 0xe1d   :  { %v1102_v52 = vpop.eup %1101 }
 0xe1e   :  { %v911_v54 = vmul.f32 %v1102_v52, %v902_v53 }
 0xe20   :  { %913 = vrot.lane.b32.xlu0 %v911_v54, %s1136_s1 }
 0xe92   :  { %v914_v1 = vpop.permute.xlu0 %913 }
 0xe93   :  { %v916_v2 = vadd.f32 %v914_v1, %v910_v0 }
 0xe95   :  { %1103 = vtanh.f32 %v916_v2 }
 0xe9b   :  { %v1104_v4 = vpop.eup %1103 }
 0xe9c   :  { %922 = vrot.lane.b32.xlu1 %v1104_v4, %s1136_s1 }
 0xf0e   :  { %v923_v8 = vpop.permute.xlu1 %922 }
 0xf0f   :  { %v925_v9 = vmul.f32 %v923_v8, %v919_v7 }
 0xf11   :  { %1033 = vmatmul.msk.f32.vlgmr.msra.gmra.mxu0 %vm191_vm5, %v925_v9 }
 0xf8e   :  { %v958_v12 = vpop.f32.mrf.mxu0 }
 0xf8f   :  { %v959_v13 = vadd.f32 %v1040_v11, %v958_v12 }
 0xf91   :  { %v961_v14 = vmax.f32 %v959_v13, 0.0 }
 0xf93   :  { %v962_v16 = vmul.f32 %v961_v14, %v961_v14 }
 0xf95   :  { %v963_v17 = vsel %vm149_vm0, %v962_v16, 0.0 }
 0xf96   :  { %964 = vadd.xlane.f32.xlu2 %v963_v17 }
0x1009   :  { %v965_v18 = vpop.xlane.xlu2 %964 }
0x100a   :  { %1105 = vrsqrt.f32 %v965_v18  ;;  %vm973_vm5 = vcmp.eq.f32.partialorder %v965_v18, inf  ;;  %v976_v59 = vand.u32 2147483648, %v965_v18  ;;  %vm975_vm6 = vcmp.eq.f32.partialorder %v965_v18, 0.0 }
0x1010   :  { %v1106_v10 = vpop.eup %1105 }
0x1011   :  { %v967_v19 = vmul.f32 %v1106_v10, %v965_v18 }
0x1013   :  { %v968_v63 = vmul.f32 %v1106_v10, %v967_v19 }
0x1015   :  { %v969_v3 = vmul.f32 0.5, %v968_v63 }
0x1017   :  { %v970_v6 = vsub.f32 1.5, %v969_v3 }
0x1019   :  { %v971_v15 = vmul.f32 %v1106_v10, %v970_v6 }
0x101b   :  { %v972_v20 = vmul.f32 %v971_v15, %v965_v18 }
0x101d   :  { %v974_v21 = vsel %vm973_vm5, %v965_v18, %v972_v20 }
0x101e   :  { %v977_v22 = vsel %vm975_vm6, %v976_v59, %v974_v21 }
0x101f   :  { %v978_v27 = vadd.f32 1e-08, %v977_v22 }
0x1021   :  { %1107 = vrcp.f32 %v978_v27  ;;  %v990_v31 = vand.u32 2147483648, %v978_v27  ;;  %v988_v23 = vand.u32 2147483647, %v978_v27  ;;  %vm984_vm7 = vweird.f32 %v978_v27 }
0x1023   :  { %v991_v33 = vor.u32 1.1754944e-38, %v990_v31  ;;  %vm989_vm9 = vcmp.eq.f32.partialorder %v988_v23, 8.507059e+37 }
0x1027   :  { %v1108_v28 = vpop.eup %1107 }
0x1028   :  { %v980_v29 = vmul.f32 %v1108_v28, %v978_v27  ;;  %vm985_vm0 = vweird.f32 %v1108_v28 }
0x1029   :  { %vm986_vm8 = vmor %vm984_vm7, %vm985_vm0 }
0x102a   :  { %v981_v30 = vsub.f32 1.0, %v980_v29 }
0x102c   :  { %v982_v32 = vmul.f32 %v1108_v28, %v981_v30 }
0x102e   :  { %v983_v24 = vadd.f32 %v1108_v28, %v982_v32 }
0x1030   :  { %v987_v26 = vsel %vm986_vm8, %v1108_v28, %v983_v24 }
0x1031   :  { %v992_v25 = vsel %vm989_vm9, %v991_v33, %v987_v26 }
0x1032   :  { %v993_v34 = vmul.f32 %v992_v25, %v961_v14 }
0x1034   :  { %994 = vst [vmem:[#allocation3] sm:$0x3] %v993_v34 }
0x1035   :  { %1005 = dma.vmem_to_hbm [thread:$0]  %s1001_s5, 32, %s1003_s27, [#allocation4]  }
0x1036   :  { %1133 = dma.done.wait [#allocation4], 32  }
0x1037   :  { %1134 = vsyncadd [#allocation4], 4294967264 }
0x1038   :  { %1010 = vsyncpa [#allocation4], 1 }

</bundles_post_ra>
